<compile_context>
chip_gen: v7x
topology: tpu7x:2x2x1
jax: 0.10.0
libtpu: 0.0.40
codegen_flags: <defaults>
</compile_context>

<pallas_src>
import jax
import jax.numpy as jnp
from jax.experimental import pallas as pl
from jax.experimental.pallas import tpu as pltpu

M_POS = 0.9
M_NEG = 0.1
LAMBDA_ = 3.0

_LANES = 128
_SUBLANES = 8
_TILE_ELEMS = _SUBLANES * _LANES          # one (8,128) vreg tile = 1024 elements
_DEFAULT_TILE_ROWS = 4096                 # (4096,128) f32 = 2 MiB/block; safe on v5e
_FAST_PATH_ELEMS = _TILE_ELEMS            # below one tile, skip the pallas_call


def _margin_loss_ref(targets, digit_probs):
    """Pure-jnp reference (also the tiny-input fast path)."""
    t = targets.astype(jnp.float32)
    p = digit_probs.astype(jnp.float32)
    present = t * jnp.maximum(M_POS - p, 0.0) ** 2
    absent = (1.0 - t) * jnp.maximum(p - M_NEG, 0.0) ** 2
    losses = LAMBDA_ * present + absent
    return jnp.mean(jnp.sum(losses, axis=1))


def _make_kernel(rows_valid: int, need_mask: bool):
    """Build the reduction kernel with the (static) valid-row count baked in."""

    def kernel(t_ref, p_ref, o_ref):
        i = pl.program_id(0)

        @pl.when(i == 0)
        def _init():
            o_ref[...] = jnp.zeros_like(o_ref)

        t = t_ref[...].astype(jnp.float32)
        p = p_ref[...].astype(jnp.float32)

        a = jnp.maximum(M_POS - p, 0.0)       # present hinge
        b = jnp.maximum(p - M_NEG, 0.0)       # absent hinge
        a2 = a * a
        b2 = b * b
        # lambda_*t*a^2 + (1-t)*b^2  ==  b^2 + t*(lambda_*a^2 - b^2)
        losses = b2 + t * (LAMBDA_ * a2 - b2)

        if need_mask:
            # Ragged final block: rows beyond `rows_valid` hold unspecified
            # data (partial DMA) -> zero their contribution.
            tr = losses.shape[0]
            row_ids = jax.lax.broadcasted_iota(jnp.int32, losses.shape, 0) + i * tr
            losses = jnp.where(row_ids < rows_valid, losses, 0.0)

        # Fold the (tr, 128) tile onto the resident (8, 128) output slab with
        # plain VPU adds; the single cross-lane reduce happens in the wrapper.
        o_ref[...] += jnp.sum(losses.reshape(-1, _SUBLANES, _LANES), axis=0)

    return kernel


def margin_loss(targets: jax.Array, digit_probs: jax.Array,
                *, tile_rows: int = _DEFAULT_TILE_ROWS) -> jax.Array:
    """targets, digit_probs: (B, C). Returns the scalar margin loss (float32)."""
    assert targets.shape == digit_probs.shape
    assert targets.ndim == 2
    B, C = targets.shape
    n = B * C

    # ---- tiny-input fast path: the pallas_call would be pure launch overhead.
    if n < _FAST_PATH_ELEMS:
        return _margin_loss_ref(targets, digit_probs)

    # ---- lane-dense (rows, 128) view, native dtypes, minimal padding --------
    n_pad = (-n) % _TILE_ELEMS            # pad to a multiple of 1024 (<= 1023)
    t_flat = jnp.ravel(targets)           # metadata-only reshape
    p_flat = jnp.ravel(digit_probs)
    if n_pad:
        # Bounded pad (< one (8,128) tile); zeros are exactly neutral here.
        t_flat = jnp.pad(t_flat, (0, n_pad))
        p_flat = jnp.pad(p_flat, (0, n_pad))
    rows = (n + n_pad) // _LANES          # multiple of 8
    t2 = t_flat.reshape(rows, _LANES)
    p2 = p_flat.reshape(rows, _LANES)

    # Tile rows: multiple of 8, never larger than the array.
    tr = max(_SUBLANES, (min(int(tile_rows), rows) // _SUBLANES) * _SUBLANES)
    grid = (-(-rows // tr),)
    need_mask = (rows % tr) != 0

    in_spec = pl.BlockSpec((tr, _LANES), lambda i: (i, 0))
    out_spec = pl.BlockSpec((_SUBLANES, _LANES), lambda i: (0, 0))

    bytes_accessed = (n * (targets.dtype.itemsize + digit_probs.dtype.itemsize)
                      + _TILE_ELEMS * 4)

    partial = pl.pallas_call(
        _make_kernel(rows, need_mask),
        out_shape=jax.ShapeDtypeStruct((_SUBLANES, _LANES), jnp.float32),
        grid=grid,
        in_specs=[in_spec, in_spec],
        out_specs=out_spec,
        compiler_params=pltpu.CompilerParams(
            dimension_semantics=("arbitrary",)),
        cost_estimate=pl.CostEstimate(
            flops=int(8 * n), transcendentals=0,
            bytes_accessed=int(bytes_accessed)),
    )(t2, p2)

    # mean over batch of sum over classes == sum(everything) / B
    return jnp.sum(partial) * (1.0 / B)


if __name__ == "__main__":
    key = jax.random.PRNGKey(0)

    def make_case(k, B, C):
        k_lbl, k_prob = jax.random.split(k)
        labels = jax.random.randint(k_lbl, (B,), 0, C)
        targets = jax.nn.one_hot(labels, C, dtype=jnp.float32)
        probs = jax.nn.sigmoid(jax.random.normal(k_prob, (B, C), dtype=jnp.float32))
        return targets, probs

    # (B, C, tile_rows):
    #   case 0: tiny  -> jnp fast path
    #   case 1: n % 1024 == 0 -> no host pad, single kernel block
    #   case 2: pad + multi-step grid + masked ragged final block
    cases = [
        (8, 16, _DEFAULT_TILE_ROWS),
        (128, 16, _DEFAULT_TILE_ROWS),
        (300, 10, 16),
    ]
    keys = jax.random.split(key, len(cases))
    for (B, C, tr), k in zip(cases, keys):
        targets, probs = make_case(k, B, C)
        out = jax.block_until_ready(margin_loss(targets, probs, tile_rows=tr))
        ref = _margin_loss_ref(targets, probs)
        assert jnp.allclose(out, ref, rtol=1e-5, atol=1e-5), (B, C, out, ref)

    print("KERNEL_OK")
</pallas_src>

<mosaic_0001>
module attributes {stable_mosaic.version = 11 : i64} {
  func.func @kernel(%arg0: i32, %arg1: memref<16x128xf32, #tpu.memory_space<vmem>>, %arg2: memref<16x128xf32, #tpu.memory_space<vmem>>, %arg3: memref<8x128xf32, #tpu.memory_space<vmem>>) attributes {dimension_semantics = [#tpu.dimension_semantics<arbitrary>], iteration_bounds = array<i64: 1>, scalar_prefetch = 0 : i64, scratch_operands = 0 : i64, tpu.core_type = #tpu.core_type<tc>, window_params = [{transform_indices = @transform_0, window_bounds = array<i64: 16, 128>}, {transform_indices = @transform_1, window_bounds = array<i64: 16, 128>}, {pipeline_mode = #tpu.pipeline_mode<synchronous>, transform_indices = @transform_2, window_bounds = array<i64: 8, 128>}]} {
    %c0_i32 = arith.constant 0 : i32
    %0 = arith.cmpi eq, %arg0, %c0_i32 : i32
    %1 = arith.extui %0 : i1 to i32
    %c0_i32_0 = arith.constant 0 : i32
    %2 = arith.cmpi ne, %1, %c0_i32_0 : i32
    scf.if %2 {
      %cst_13 = arith.constant 0.000000e+00 : f32
      %25 = vector.broadcast %cst_13 : f32 to vector<8x128xf32>
      %c0_14 = arith.constant 0 : index
      %c0_15 = arith.constant 0 : index
      %26 = vector.load %arg3[%c0_14, %c0_15] : memref<8x128xf32, #tpu.memory_space<vmem>>, vector<8x128xf32>
      tpu.vector_store %arg3[%c0_14, %c0_15], %25 {strides = array<i32>} : memref<8x128xf32, #tpu.memory_space<vmem>>, vector<8x128xf32>,
    } else {
    }
    %c0 = arith.constant 0 : index
    %c0_1 = arith.constant 0 : index
    %3 = vector.load %arg1[%c0, %c0_1] : memref<16x128xf32, #tpu.memory_space<vmem>>, vector<16x128xf32>
    %c0_2 = arith.constant 0 : index
    %c0_3 = arith.constant 0 : index
    %4 = vector.load %arg2[%c0_2, %c0_3] : memref<16x128xf32, #tpu.memory_space<vmem>>, vector<16x128xf32>
    %cst = arith.constant 0.899999976 : f32
    %5 = vector.broadcast %cst : f32 to vector<16x128xf32>
    %6 = arith.subf %5, %4 : vector<16x128xf32>
    %cst_4 = arith.constant 0.000000e+00 : f32
    %7 = vector.broadcast %cst_4 : f32 to vector<16x128xf32>
    %8 = arith.maximumf %6, %7 : vector<16x128xf32>
    %cst_5 = arith.constant 1.000000e-01 : f32
    %9 = vector.broadcast %cst_5 : f32 to vector<16x128xf32>
    %10 = arith.subf %4, %9 : vector<16x128xf32>
    %cst_6 = arith.constant 0.000000e+00 : f32
    %11 = vector.broadcast %cst_6 : f32 to vector<16x128xf32>
    %12 = arith.maximumf %10, %11 : vector<16x128xf32>
    %13 = arith.mulf %8, %8 : vector<16x128xf32>
    %14 = arith.mulf %12, %12 : vector<16x128xf32>
    %cst_7 = arith.constant 3.000000e+00 : f32
    %15 = vector.broadcast %cst_7 : f32 to vector<16x128xf32>
    %16 = arith.mulf %15, %13 : vector<16x128xf32>
    %17 = arith.subf %16, %14 : vector<16x128xf32>
    %18 = arith.mulf %3, %17 : vector<16x128xf32>
    %19 = arith.addf %14, %18 : vector<16x128xf32>
    %c0_8 = arith.constant 0 : index
    %c0_9 = arith.constant 0 : index
    %20 = vector.load %arg3[%c0_8, %c0_9] : memref<8x128xf32, #tpu.memory_space<vmem>>, vector<8x128xf32>
    %21 = vector.shape_cast %19 : vector<16x128xf32> to vector<2x8x128xf32>
    %cst_10 = arith.constant dense<0.000000e+00> : vector<8x128xf32>
    %22 = vector.multi_reduction <add>, %21, %cst_10 [0] : vector<2x8x128xf32> to vector<8x128xf32>
    %23 = arith.addf %20, %22 : vector<8x128xf32>
    %c0_11 = arith.constant 0 : index
    %c0_12 = arith.constant 0 : index
    %24 = vector.load %arg3[%c0_11, %c0_12] : memref<8x128xf32, #tpu.memory_space<vmem>>, vector<8x128xf32>
    tpu.vector_store %arg3[%c0_11, %c0_12], %23 {strides = array<i32>} : memref<8x128xf32, #tpu.memory_space<vmem>>, vector<8x128xf32>,
    return
  }
  func.func @transform_0(%arg0: i32) -> (i32, i32) {
    %c0_i32 = arith.constant 0 : i32
    %c0_i32_0 = arith.constant 0 : i32
    return %arg0, %c0_i32 : i32, i32
  }
  func.func @transform_1(%arg0: i32) -> (i32, i32) {
    %c0_i32 = arith.constant 0 : i32
    %c0_i32_0 = arith.constant 0 : i32
    return %arg0, %c0_i32 : i32, i32
  }
  func.func @transform_2(%arg0: i32) -> (i32, i32) {
    %c0_i32 = arith.constant 0 : i32
    %c0_i32_0 = arith.constant 0 : i32
    %c0_i32_1 = arith.constant 0 : i32
    return %c0_i32, %c0_i32_0 : i32, i32
  }
}

</mosaic_0001>

<bundles_post_ra>
// kernel: tpu_custom_call.1
= control target key start
LH: loop header
LB: loop body
LE: loop exit
PB: predicated region body
PF: predicated region fallthrough
CT: control target
= control target key end

     0   :  { %7 = vsyncpa [#allocation3], 0  ;;  %s225_s0 = inlined_call_operand.hbm [shape: f32[16,128], index: 0, kind: input, shape index: {}]   ;;  %s226_s1 = inlined_call_operand.hbm [shape: f32[16,128], index: 1, kind: input, shape index: {}]   ;;  %s227_s2 = inlined_call_operand.hbm [shape: f32[8,128], index: 2, kind: output, shape index: {}]  }
   0x1   :  { %8 = vsyncpa [#allocation6], 0 }
   0x2   :  { %9 = vsyncpa [#allocation4], 0  ;;  %s169_s9 = smov [#allocation2]   ;;  %s97_s13 = scalar_lea.hbm %s225_s0, 256 }
   0x3   :  { %s15_s10 = sshll.u32 %s169_s9, 4  ;;  %p98_p0 = scmp.ne.s32.totalorder %s225_s0, %s97_s13  ;;  %s16_s10 = int_to_ptr.vmem [resolvable:$true] %s15_s10 }
   0x4   :  { %p101_p1 = scmp.lt.u32.totalorder %s97_s13, %s225_s0 }
   0x6   :  { %p103_p2 = pnand %p101_p1, %p98_p0 }
   0x8   :  { %106 = shalt.err (!%p103_p2)
}
   0x9   :  { %s107_s18 = scalar_lea.vmem %s16_s10, 256  ;;  %p112_p4 = scmp.lt.s32.totalorder %s16_s10, %s16_s10 }
   0xa   :  { %p108_p3 = scmp.ne.s32.totalorder %s16_s10, %s107_s18  ;;  %p113_p5 = scmp.lt.s32.totalorder %s107_s18, %s107_s18 }
   0xc   :  { %p114_p6 = por %p113_p5, %p112_p4 }
   0xe   :  { %p115_p7 = pnand %p114_p6, %p108_p3 }
  0x10   :  { %118 = shalt.err (!%p115_p7)
}
  0x11   :  { %s170_s19 = smov 128   ;;  %s171_s20 = smov 8  }
  0x12   :  { %21 = dma.hbm_to_vmem [thread:$0]  %s225_s0, 256, %s16_s10, [#allocation3], %s170_s19, %s170_s19, %s171_s20  }
  0x13   :  { %s172_s23 = smov [#allocation5]   ;;  %s119_s27 = scalar_lea.hbm %s226_s1, 256 }
  0x14   :  { %s27_s24 = sshll.u32 %s172_s23, 4  ;;  %p120_p8 = scmp.ne.s32.totalorder %s226_s1, %s119_s27  ;;  %s28_s24 = int_to_ptr.vmem [resolvable:$true] %s27_s24 }
  0x15   :  { %p123_p9 = scmp.lt.u32.totalorder %s119_s27, %s226_s1 }
  0x17   :  { %p125_p10 = pnand %p123_p9, %p120_p8 }
  0x19   :  { %128 = shalt.err (!%p125_p10)
}
  0x1a   :  { %s129_s4 = scalar_lea.vmem %s28_s24, 256  ;;  %p134_p12 = scmp.lt.s32.totalorder %s28_s24, %s28_s24 }
  0x1b   :  { %p130_p11 = scmp.ne.s32.totalorder %s28_s24, %s129_s4  ;;  %p135_p13 = scmp.lt.s32.totalorder %s129_s4, %s129_s4 }
  0x1d   :  { %p136_p0 = por %p135_p13, %p134_p12 }
  0x1f   :  { %p137_p1 = pnand %p136_p0, %p130_p11 }
  0x21   :  { %140 = shalt.err (!%p137_p1)
}
  0x22   :  { %33 = dma.hbm_to_vmem [thread:$0]  %s226_s1, 256, %s28_s24, [#allocation6], %s170_s19, %s170_s19, %s171_s20  }
  0x23   :  { %163 = dma.done.wait [#allocation3], 256  }
  0x24   :  { %164 = vsyncadd [#allocation3], 4294967040 }
  0x25   :  { %165 = dma.done.wait [#allocation6], 256  }
  0x26   :  { %166 = vsyncadd [#allocation6], 4294967040  ;;  %v47_v0 = vld [vmem:[#allocation5] sm:$0xff]  ;;  %v48_v1 = vld [vmem:[#allocation5 + $0x8] sm:$0xff]  ;;  %s173_s1 = smov [#allocation7]  }
  0x27   :  { %v49_v2 = vsub.f32 0.9, %v47_v0  ;;  %v89_v3 = vadd.f32 -0.1, %v47_v0  ;;  %v50_v4 = vsub.f32 0.9, %v48_v1 }
  0x28   :  { %v90_v5 = vadd.f32 -0.1, %v48_v1  ;;  %v45_v15 = vld [vmem:[#allocation2] sm:$0xff]  ;;  %v46_v17 = vld [vmem:[#allocation2 + $0x8] sm:$0xff]  ;;  %s79_s6 = sshll.u32 %s173_s1, 4  ;;  %s80_s6 = int_to_ptr.vmem [resolvable:$true] %s79_s6 }
  0x29   :  { %v51_v6 = vmax.f32 %v49_v2, 0.0  ;;  %v55_v7 = vmax.f32 %v89_v3, 0.0  ;;  %v52_v8 = vmax.f32 %v50_v4, 0.0  ;;  %s141_s7 = scalar_lea.vmem %s80_s6, 128  ;;  %p146_p3 = scmp.lt.s32.totalorder %s80_s6, %s80_s6 }
  0x2a   :  { %v56_v9 = vmax.f32 %v90_v5, 0.0  ;;  %p142_p2 = scmp.ne.s32.totalorder %s80_s6, %s141_s7  ;;  %p147_p4 = scmp.lt.s32.totalorder %s141_s7, %s141_s7 }
  0x2b   :  { %v57_v10 = vmul.f32 %v51_v6, %v51_v6  ;;  %v59_v11 = vmul.f32 %v55_v7, %v55_v7  ;;  %v58_v12 = vmul.f32 %v52_v8, %v52_v8 }
  0x2c   :  { %v60_v13 = vmul.f32 %v56_v9, %v56_v9  ;;  %p148_p5 = por %p147_p4, %p146_p3 }
  0x2d   :  { %v61_v14 = vmul.f32 3.0, %v57_v10  ;;  %v62_v16 = vmul.f32 3.0, %v58_v12 }
  0x2e   :  { %p149_p6 = pnand %p148_p5, %p142_p2 }
  0x2f   :  { %v63_v18 = vsub.f32 %v61_v14, %v59_v11  ;;  %v64_v19 = vsub.f32 %v62_v16, %v60_v13 }
  0x31   :  { %v65_v20 = vmul.f32 %v63_v18, %v45_v15  ;;  %v66_v21 = vmul.f32 %v64_v19, %v46_v17 }
  0x33   :  { %v67_v22 = vadd.f32 %v65_v20, %v59_v11  ;;  %v68_v23 = vadd.f32 %v66_v21, %v60_v13 }
  0x35   :  { %v70_v24 = vadd.f32 %v68_v23, %v67_v22 }
  0x37   :  { %72 = vst [vmem:[#allocation7] sm:$0xff] %v70_v24 }
  0x38   :  { %152 = shalt.err (!%p149_p6)
}
  0x39   :  { %s153_s10 = scalar_lea.hbm %s227_s2, 128 }
  0x3a   :  { %p154_p7 = scmp.ne.s32.totalorder %s227_s2, %s153_s10  ;;  %p157_p8 = scmp.lt.u32.totalorder %s153_s10, %s227_s2 }
  0x3c   :  { %p159_p9 = pnand %p157_p8, %p154_p7 }
  0x3e   :  { %162 = shalt.err (!%p159_p9)
}
  0x3f   :  { %82 = dma.vmem_to_hbm [thread:$0]  %s80_s6, 128, %s227_s2, [#allocation4]  }
  0x40   :  { %167 = dma.done.wait [#allocation4], 128  }
  0x41   :  { %168 = vsyncadd [#allocation4], 4294967168 }
  0x42   :  { %86 = vsyncpa [#allocation3], 1 }
  0x43   :  { %87 = vsyncpa [#allocation6], 1 }
  0x44   :  { %88 = vsyncpa [#allocation4], 1 }

</bundles_post_ra>
